<compile_context>
chip_gen: v5e
topology: v5e:2x2
jax: 0.10.0
libtpu: 0.0.40
codegen_flags: <defaults>
</compile_context>

<pallas_src>
import functools

import jax
import jax.numpy as jnp
from jax.experimental import pallas as pl
from jax.experimental.pallas import tpu as pltpu


def _elu_plus_one_kernel(x_ref, o_ref):
    x = x_ref[...]
    # ELU(alpha=1): x if x > 0 else exp(x) - 1 ; then +1  =>  x + 1 if x > 0 else exp(x)
    one = jnp.ones((), dtype=x.dtype)
    o_ref[...] = jnp.where(x > 0, x + one, jnp.exp(x)).astype(o_ref.dtype)


@functools.lru_cache(maxsize=1)
def _tpu_generation() -> str:
    """Best-effort TPU generation detection (used only for tile-size heuristics)."""
    try:
        kind = jax.devices()[0].device_kind.lower()
    except Exception:
        return "unknown"
    if "v6" in kind:
        return "v6e"
    if "v5" in kind:
        return "v5e"
    if "7" in kind:
        return "v7x"
    return "unknown"


def _pick_lanes(total: int) -> int:
    """Prefer a multiple-of-128 divisor of `total` so the 2-D reshape is copy-free."""
    for lanes in (512, 384, 256, 128):
        if total % lanes == 0:
            return lanes
    return 128  # no divisor: minimal pad up to the next multiple of 128


def _pick_layout(total: int, itemsize: int, tile_bytes=None):
    """Choose a lane-dense 2-D layout (rows, lanes) and row tile for `total` elements."""
    gen = _tpu_generation()
    # dtype-aware sublane packing multiple: f32->8, bf16->16, int8/fp8->32
    sub = {4: 8, 2: 16, 1: 32}.get(itemsize, 8)

    lanes = _pick_lanes(total)
    padded_total = pl.cdiv(total, lanes) * lanes  # == total when a divisor was found
    rows = padded_total // lanes

    if tile_bytes is None:
        # v6e: 128 MiB VMEM -> bigger tiles are free.  v5e/unknown: ~4 MiB is on the
        # HBM roofline plateau.  v7x: additionally cap so mid-size tensors keep
        # >= ~8 grid steps (megacore sharding + prefetch/writeback overlap).
        tile_bytes = 8 * 1024 * 1024 if gen == "v6e" else 4 * 1024 * 1024
        if gen == "v7x":
            min_tile = sub * lanes * itemsize
            tile_bytes = min(tile_bytes, max(min_tile, (padded_total * itemsize) // 8))

    tile_rows = max(sub, min(rows, tile_bytes // (lanes * itemsize)))
    tile_rows = (tile_rows // sub) * sub  # keep (sub,128)-aligned block shape
    if tile_rows >= rows:
        # Single block equal to the full array (valid for any row count).
        tile_rows = rows
        grid = 1
    else:
        # Ragged final block is handled by Pallas (OOB rows masked on writeback).
        grid = pl.cdiv(rows, tile_rows)
    return lanes, rows, tile_rows, grid, padded_total


def elu_feature_map(x: jax.Array, *, alias_output_to_input: bool = False,
                    tile_bytes: int | None = None) -> jax.Array:
    """ELU(x) + 1, elementwise, computed in a Pallas TPU kernel."""
    orig_shape = x.shape
    total = x.size
    if total == 0:
        return x
    itemsize = jnp.dtype(x.dtype).itemsize

    lanes, rows, tile_rows, grid, padded_total = _pick_layout(total, itemsize, tile_bytes)

    flat = x.reshape(-1)
    if padded_total != total:
        # Only taken when `total` has no multiple-of-128 divisor; pads < 128 elements.
        flat = jnp.concatenate(
            [flat, jnp.zeros((padded_total - total,), dtype=x.dtype)]
        )
    x2d = flat.reshape(rows, lanes)  # copy-free view in the divisible case

    # True working set: double-buffered input + output tiles, plus slack for
    # compiler scratch.  Stays well inside v7x's 64 MiB physical VMEM.
    tile_vmem = tile_rows * lanes * itemsize
    vmem_limit = max(16 * 1024 * 1024, 4 * tile_vmem + 4 * 1024 * 1024)

    call_kwargs = {}
    if alias_output_to_input:
        # Reuse the input HBM buffer for the output.  Only beneficial when the
        # caller no longer needs x (otherwise XLA inserts a defensive copy).
        call_kwargs["input_output_aliases"] = {0: 0}

    out2d = pl.pallas_call(
        _elu_plus_one_kernel,
        out_shape=jax.ShapeDtypeStruct((rows, lanes), x.dtype),
        grid_spec=pltpu.PrefetchScalarGridSpec(
            num_scalar_prefetch=0,
            grid=(grid,),
            in_specs=[pl.BlockSpec((tile_rows, lanes), lambda i: (i, 0))],
            out_specs=pl.BlockSpec((tile_rows, lanes), lambda i: (i, 0)),
        ),
        compiler_params=pltpu.CompilerParams(
            dimension_semantics=("parallel",),
            vmem_limit_bytes=vmem_limit,
        ),
        **call_kwargs,
    )(x2d)

    out = out2d.reshape(-1)
    if padded_total != total:
        out = out[:total]
    return out.reshape(orig_shape)


def elu_feature_map_ref(x: jax.Array) -> jax.Array:
    # Pure-JAX reference (matches torch.nn.ELU(alpha=1.0)(x) + 1).
    return jnp.where(x > 0, x, jnp.exp(x) - 1.0) + 1.0


if __name__ == "__main__":
    key = jax.random.PRNGKey(0)
    k1, k2, k3, k4 = jax.random.split(key, 4)

    # 1) Typical linear-transformer feature input: total divisible by 512 ->
    #    copy-free reshape path, single whole-array block.
    x = jax.random.normal(k1, (2, 8, 4, 32), dtype=jnp.float32) * 2.0
    y = jax.block_until_ready(elu_feature_map(x))
    assert y.shape == x.shape
    assert jnp.allclose(y, elu_feature_map_ref(x), atol=1e-6, rtol=1e-6), "mismatch (divisible path)"

    # 2) Awkward shape with no multiple-of-128 divisor -> minimal-pad path.
    x2 = jax.random.normal(k2, (3, 7, 5, 33), dtype=jnp.float32)
    y2 = jax.block_until_ready(elu_feature_map(x2))
    assert y2.shape == x2.shape
    assert jnp.allclose(y2, elu_feature_map_ref(x2), atol=1e-6, rtol=1e-6), "mismatch (padded path)"

    # 3) Ragged-final-block path: force small tiles so grid=3 with a partial
    #    last block (rows=40, tile_rows=16) -> checks OOB rows are masked on write.
    x3 = jax.random.normal(k3, (5, 8, 512), dtype=jnp.float32)
    y3 = jax.block_until_ready(elu_feature_map(x3, tile_bytes=16 * 512 * 4))
    assert y3.shape == x3.shape
    assert jnp.allclose(y3, elu_feature_map_ref(x3), atol=1e-6, rtol=1e-6), "mismatch (ragged path)"

    # 4) bf16 input (sublane multiple 16).
    x4 = (jax.random.normal(k4, (4, 16, 256), dtype=jnp.float32) * 2.0).astype(jnp.bfloat16)
    y4 = jax.block_until_ready(elu_feature_map(x4))
    ref4 = elu_feature_map_ref(x4.astype(jnp.float32))
    assert y4.shape == x4.shape and y4.dtype == x4.dtype
    assert jnp.allclose(y4.astype(jnp.float32), ref4, atol=5e-2, rtol=5e-2), "mismatch (bf16 path)"

    print("KERNEL_OK")
</pallas_src>

<mosaic_0001>
module attributes {stable_mosaic.version = 11 : i64} {
  func.func @_elu_plus_one_kernel(%arg0: i32, %arg1: memref<4x512xf32, #tpu.memory_space<vmem>>, %arg2: memref<4x512xf32, #tpu.memory_space<vmem>>) attributes {dimension_semantics = [#tpu.dimension_semantics<parallel>], iteration_bounds = array<i64: 1>, scalar_prefetch = 0 : i64, scratch_operands = 0 : i64, tpu.core_type = #tpu.core_type<tc>, window_params = [{transform_indices = @transform_0, window_bounds = array<i64: 4, 512>}, {transform_indices = @transform_1, window_bounds = array<i64: 4, 512>}]} {
    %c0 = arith.constant 0 : index
    %c0_0 = arith.constant 0 : index
    %0 = vector.load %arg1[%c0, %c0_0] : memref<4x512xf32, #tpu.memory_space<vmem>>, vector<4x512xf32>
    %cst = arith.constant 0.000000e+00 : f32
    %1 = vector.broadcast %cst : f32 to vector<4x512xf32>
    %2 = arith.cmpf ogt, %0, %1 : vector<4x512xf32>
    %cst_1 = arith.constant 1.000000e+00 : f32
    %3 = vector.broadcast %cst_1 : f32 to vector<4x512xf32>
    %4 = arith.addf %0, %3 : vector<4x512xf32>
    %5 = math.exp %0 : vector<4x512xf32>
    %6 = arith.select %2, %4, %5 : vector<4x512xi1>, vector<4x512xf32>
    %c0_2 = arith.constant 0 : index
    %c0_3 = arith.constant 0 : index
    %7 = vector.load %arg2[%c0_2, %c0_3] : memref<4x512xf32, #tpu.memory_space<vmem>>, vector<4x512xf32>
    tpu.vector_store %arg2[%c0_2, %c0_3], %6 {strides = array<i32>} : memref<4x512xf32, #tpu.memory_space<vmem>>, vector<4x512xf32>,
    return
  }
  func.func @transform_0(%arg0: i32) -> (i32, i32) {
    %c0_i32 = arith.constant 0 : i32
    %c0_i32_0 = arith.constant 0 : i32
    return %arg0, %c0_i32 : i32, i32
  }
  func.func @transform_1(%arg0: i32) -> (i32, i32) {
    %c0_i32 = arith.constant 0 : i32
    %c0_i32_0 = arith.constant 0 : i32
    return %arg0, %c0_i32 : i32, i32
  }
}

</mosaic_0001>

<bundles_post_ra>
// kernel: tpu_custom_call.1
= control target key start
LH: loop header
LB: loop body
LE: loop exit
PB: predicated region body
PF: predicated region fallthrough
CT: control target
= control target key end

     0   :  { %6 = vsyncpa [#allocation3], 0  ;;  %s130_s0 = inlined_call_operand.hbm [shape: f32[4,512], index: 0, kind: input, shape index: {}]   ;;  %s131_s1 = inlined_call_operand.hbm [shape: f32[4,512], index: 1, kind: output, shape index: {}]  }
   0x1   :  { %7 = vsyncpa [#allocation4], 0  ;;  %s13_s8 = sshll.u32 %s130_s0, 4  ;;  %s112_s9 = smov [#allocation2]   ;;  %s14_s8 = int_to_ptr.hbm [resolvable:$true] %s13_s8 }
   0x2   :  { %s15_s10 = sshll.u32 %s112_s9, 4  ;;  %s16_s10 = int_to_ptr.vmem [resolvable:$true] %s15_s10 }
   0x3   :  { %18 = dma.hbm_to_vmem [thread:$0]  %s14_s8, 256, %s16_s10, [#allocation3]  }
   0x4   :  { %108 = dma.done.wait [#allocation3], 256  }
   0x5   :  { %109 = vsyncadd [#allocation3], 4294967040  ;;  %v23_v0 = vld [vmem:[#allocation2] sm:$0xff]  ;;  %v24_v1 = vld [vmem:[#allocation2 + $0x8] sm:$0xff]  ;;  %s113_s11 = smov [#allocation5]   ;;  %s44_s14 = sshll.u32 %s131_s1, 4  ;;  %s45_s14 = int_to_ptr.hbm [resolvable:$true] %s44_s14 }
   0x6   :  { %v29_v2 = vmul.f32 1.442695, %v23_v0  ;;  %v31_v3 = vmul.f32 1.442695, %v24_v1  ;;  %v27_v4 = vadd.f32 1.0, %v23_v0  ;;  %vm25_vm0 = vcmp.gt.f32.partialorder %v23_v0, 0.0 }
   0x7   :  { %v28_v5 = vadd.f32 1.0, %v24_v1  ;;  %s42_s12 = sshll.u32 %s113_s11, 4  ;;  %vm26_vm1 = vcmp.gt.f32.partialorder %v24_v1, 0.0  ;;  %s43_s12 = int_to_ptr.vmem [resolvable:$true] %s42_s12 }
   0x8   :  { %56 = vpow2.f32 %v29_v2 }
   0x9   :  { %58 = vpow2.f32 %v31_v3 }
   0xe   :  { %v57_v6 = vpop.eup %56 }
   0xf   :  { %v59_v7 = vpop.eup %58  ;;  %v33_v8 = vsel %vm25_vm0, %v27_v4, %v57_v6 }
  0x10   :  { %35 = vst [vmem:[#allocation5] sm:$0xff] %v33_v8  ;;  %v34_v9 = vsel %vm26_vm1, %v28_v5, %v59_v7 }
  0x11   :  { %36 = vst [vmem:[#allocation5 + $0x8] sm:$0xff] %v34_v9 }
  0x12   :  { %47 = dma.vmem_to_hbm [thread:$0]  %s43_s12, 256, %s45_s14, [#allocation4]  }
  0x13   :  { %110 = dma.done.wait [#allocation4], 256  }
  0x14   :  { %111 = vsyncadd [#allocation4], 4294967040 }
  0x15   :  { %52 = vsyncpa [#allocation3], 1 }
  0x16   :  { %53 = vsyncpa [#allocation4], 1 }

</bundles_post_ra>
